<compile_context>
chip_gen: v7x
topology: tpu7x:2x2x1
jax: 0.10.0
libtpu: 0.0.40
codegen_flags: <defaults>
</compile_context>

<pallas_src>
from functools import partial

import jax
import jax.numpy as jnp
from jax import lax
from jax.experimental import pallas as pl
from jax.experimental.pallas import tpu as pltpu


def _round_up(x, m):
    return (x + m - 1) // m * m


# ----------------------------------------------------------------------------
# Fused Pallas kernel: one conv matmul + one batched fc1 contraction + one
# classifier matmul, single lane-dense output slab.
# ----------------------------------------------------------------------------
def _fused_forward_kernel(patchesT_ref, params_ref, w1r_ref, out_ref, *,
                          n_img: int, hw: int, conv_ch: int, k9c: int,
                          hidden: int, num_classes: int):
    # ---- unpack the packed small-parameter buffer (f32, (rows,128)) --------
    wcT = params_ref[0:conv_ch, 0:k9c]                              # (Cout, 9Cin)
    bc = params_ref[0:conv_ch, k9c:k9c + 1]                         # (Cout, 1)
    wcls = params_ref[conv_ch:conv_ch + hidden, 0:num_classes]      # (hidden, cls)
    r = conv_ch + hidden
    b1 = params_ref[r:r + 1, 0:hidden]                              # (1, hidden)
    bcls = params_ref[r + 1:r + 2, 0:num_classes]                   # (1, cls)

    # ---- conv as one lane-dense transposed bf16 matmul on the MXU ----------
    # (Cout, 9Cin) @ (9Cin, N*HW) -> (Cout, N*HW), f32 accumulate.
    convT = jnp.dot(wcT.astype(jnp.bfloat16), patchesT_ref[...],
                    preferred_element_type=jnp.float32)
    convT = jnp.maximum(convT + bc, 0.0)                            # bias + ReLU (f32)

    # ---- fc1: ONE batched contraction over (Cout, HW) ----------------------
    # torch NCHW flatten == row-major flatten of convT per image, so viewing
    # convT as (Cout, N, HW) and contracting HW against w1r (Cout, HW, hidden)
    # with batch dim Cout, then summing over Cout, is exactly flat @ fc1_w.
    conv3 = convT.reshape(conv_ch, n_img, hw).astype(jnp.bfloat16)
    part = lax.dot_general(conv3, w1r_ref[...],
                           dimension_numbers=(((2,), (1,)), ((0,), (0,))),
                           preferred_element_type=jnp.float32)      # (Cout, N, hidden)
    feats = jnp.maximum(part.sum(axis=0) + b1, 0.0)                 # (N, hidden) f32

    # ---- classifier: single small f32 matmul --------------------------------
    logits = jnp.dot(feats, wcls, preferred_element_type=jnp.float32) + bcls

    # ---- single lane-dense (N, 128) output slab -----------------------------
    pad = out_ref.shape[1] - hidden - num_classes
    out_ref[...] = jnp.concatenate(
        [feats, logits, jnp.zeros((n_img, pad), jnp.float32)], axis=1)


def fused_decoupled_forward(patchesT, params, w1r, *, n_img, conv_ch, k9c,
                            hidden, num_classes):
    """patchesT: (9*Cin, N*H*W) bf16; params: packed (rows,128) f32;
    w1r: (Cout, H*W, hidden) bf16.  Returns a (N, 128) f32 slab."""
    m = patchesT.shape[1]
    hw = m // n_img
    out_lanes = 128
    assert hidden + num_classes <= out_lanes

    flops = 2 * (conv_ch * k9c * m                       # conv matmul
                 + conv_ch * n_img * hw * hidden         # fc1
                 + n_img * hidden * num_classes)         # classifier
    bytes_accessed = (patchesT.size * 2 + params.size * 4 + w1r.size * 2
                      + n_img * out_lanes * 4)

    kernel = partial(_fused_forward_kernel, n_img=n_img, hw=hw,
                     conv_ch=conv_ch, k9c=k9c, hidden=hidden,
                     num_classes=num_classes)
    return pl.pallas_call(
        kernel,
        out_shape=jax.ShapeDtypeStruct((n_img, out_lanes), jnp.float32),
        grid=(1,),
        # Single full-array block per operand (block shape == full array shape
        # satisfies the TPU tiling rule); everything lives in VMEM at once.
        in_specs=[
            pl.BlockSpec(patchesT.shape, lambda i: (0, 0)),
            pl.BlockSpec(params.shape, lambda i: (0, 0)),
            pl.BlockSpec(w1r.shape, lambda i: (0, 0, 0)),
        ],
        out_specs=pl.BlockSpec((n_img, out_lanes), lambda i: (0, 0)),
        compiler_params=pltpu.CompilerParams(dimension_semantics=("arbitrary",)),
        cost_estimate=pl.CostEstimate(flops=flops, transcendentals=0,
                                      bytes_accessed=bytes_accessed),
    )(patchesT, params, w1r)


# ----------------------------------------------------------------------------
# Glue: transposed im2col for the 3x3, stride-1, pad-1 conv, built DIRECTLY in
# (9*Cin, N*H*W) layout (no trailing transpose). Row index = (kh*3+kw)*C + c,
# column index = n*H*W + h*W + w (== torch NCHW pixel order).
# ----------------------------------------------------------------------------
def _im2col_transposed(x_nchw):
    N, C, H, W = x_nchw.shape
    xc = jnp.transpose(x_nchw, (1, 0, 2, 3))                     # (C, N, H, W)
    xp = jnp.pad(xc, ((0, 0), (0, 0), (1, 1), (1, 1)))
    rows = [xp[:, :, kh:kh + H, kw:kw + W].reshape(C, N * H * W)
            for kh in range(3) for kw in range(3)]
    return jnp.concatenate(rows, axis=0)                          # (9C, N*H*W)


# ----------------------------------------------------------------------------
# The DecoupledModel forward pass
# ----------------------------------------------------------------------------
class DecoupledModelPallas:
    """Concrete DecoupledModel: forward(x) = classifier(base(x)), fused on TPU."""

    def __init__(self, key, in_ch=4, conv_ch=8, spatial=16, hidden=32,
                 num_classes=10):
        self.in_ch, self.conv_ch, self.spatial = in_ch, conv_ch, spatial
        self.hidden, self.num_classes = hidden, num_classes
        k = jax.random.split(key, 6)
        # Conv2d(in_ch, conv_ch, kernel=3, pad=1) weights, stored (3,3,Cin,Cout)
        fan_c = in_ch * 9
        self.conv_w = (jax.random.normal(k[0], (3, 3, in_ch, conv_ch), jnp.float32)
                       / jnp.sqrt(fan_c))
        self.conv_b = 0.01 * jax.random.normal(k[1], (conv_ch,), jnp.float32)
        # Linear(conv_ch*spatial*spatial -> hidden), stored (in, out)
        fan_1 = conv_ch * spatial * spatial
        self.fc1_w = (jax.random.normal(k[2], (fan_1, hidden), jnp.float32)
                      / jnp.sqrt(fan_1))
        self.fc1_b = 0.01 * jax.random.normal(k[3], (hidden,), jnp.float32)
        # classifier: Linear(hidden -> num_classes), stored (in, out)
        self.cls_w = (jax.random.normal(k[4], (hidden, num_classes), jnp.float32)
                      / jnp.sqrt(hidden))
        self.cls_b = 0.01 * jax.random.normal(k[5], (num_classes,), jnp.float32)

        # ---- one-time re-layout into the fused-kernel layouts --------------
        hw = spatial * spatial
        # (Cout, 9*Cin): column index (kh*3+kw)*Cin + c  -- matches patchesT rows.
        self.wcT = jnp.transpose(self.conv_w, (3, 0, 1, 2)).reshape(conv_ch,
                                                                    9 * in_ch)
        # fc1 weight rows are ordered c*H*W + h*W + w (torch NCHW flatten), so a
        # plain reshape yields the per-output-channel (H*W, hidden) slabs. bf16.
        self.w1r_bf = self.fc1_w.reshape(conv_ch, hw, hidden).astype(jnp.bfloat16)

        # Pack all tiny parameters into a single padded f32 VMEM slab.
        rows = _round_up(conv_ch + hidden + 2, 8)
        lanes = 128
        assert max(9 * in_ch + 1, hidden, num_classes) <= lanes
        P = jnp.zeros((rows, lanes), jnp.float32)
        P = P.at[0:conv_ch, 0:9 * in_ch].set(self.wcT)
        P = P.at[0:conv_ch, 9 * in_ch].set(self.conv_b)
        P = P.at[conv_ch:conv_ch + hidden, 0:num_classes].set(self.cls_w)
        P = P.at[conv_ch + hidden, 0:hidden].set(self.fc1_b)
        P = P.at[conv_ch + hidden + 1, 0:num_classes].set(self.cls_b)
        self.params = P

    # ---- single fused kernel call -------------------------------------------
    def _run(self, x_nchw):
        N, C, H, W = x_nchw.shape
        assert C == self.in_ch and H == self.spatial and W == self.spatial
        patchesT = _im2col_transposed(x_nchw).astype(jnp.bfloat16)
        slab = fused_decoupled_forward(
            patchesT, self.params, self.w1r_bf,
            n_img=N, conv_ch=self.conv_ch, k9c=9 * self.in_ch,
            hidden=self.hidden, num_classes=self.num_classes)
        feats = slab[:, :self.hidden]
        logits = slab[:, self.hidden:self.hidden + self.num_classes]
        return logits, feats

    # ---- DecoupledModel.forward ---------------------------------------------
    def forward(self, x):
        logits, _ = self._run(x)
        return logits

    # ---- DecoupledModel.get_last_features (no dropout in this model) --------
    def get_last_features(self, x):
        _, feats = self._run(x)
        return feats

    # ---- pure-JAX references (un-fused) for correctness checking only -------
    def reference_forward(self, x_nchw):
        """Exact f32 reference of the concrete module."""
        N, C, H, W = x_nchw.shape
        patches = _im2col_transposed(x_nchw).T                     # (N*H*W, 9C)
        conv = jnp.maximum(patches @ self.conv_w.reshape(9 * C, self.conv_ch)
                           + self.conv_b, 0.0)
        conv_nchw = conv.reshape(N, H, W, self.conv_ch).transpose(0, 3, 1, 2)
        flat = conv_nchw.reshape(N, -1)
        feat = jnp.maximum(flat @ self.fc1_w + self.fc1_b, 0.0)
        return feat @ self.cls_w + self.cls_b

    def reference_forward_bf16(self, x_nchw):
        """Same math as the kernel (bf16 matmul operands, f32 accumulate)."""
        N, C, H, W = x_nchw.shape
        hw = H * W
        patchesT = _im2col_transposed(x_nchw).astype(jnp.bfloat16)
        convT = jnp.dot(self.wcT.astype(jnp.bfloat16), patchesT,
                        preferred_element_type=jnp.float32)
        convT = jnp.maximum(convT + self.conv_b[:, None], 0.0)
        conv3 = convT.reshape(self.conv_ch, N, hw).astype(jnp.bfloat16)
        part = lax.dot_general(conv3, self.w1r_bf,
                               dimension_numbers=(((2,), (1,)), ((0,), (0,))),
                               preferred_element_type=jnp.float32)
        feats = jnp.maximum(part.sum(axis=0) + self.fc1_b, 0.0)
        return feats @ self.cls_w + self.cls_b


if __name__ == "__main__":
    key = jax.random.PRNGKey(0)
    k_param, k_x = jax.random.split(key)

    model = DecoupledModelPallas(k_param)

    # Input layout: PyTorch-style NCHW float32, batch=2, channels=4, 16x16.
    x = jax.random.normal(k_x, (2, 4, 16, 16), jnp.float32)

    out = jax.block_until_ready(jax.jit(model.forward)(x))
    assert out.shape == (2, 10) and out.dtype == jnp.float32

    feats = jax.block_until_ready(jax.jit(model.get_last_features)(x))
    assert feats.shape == (2, 32) and feats.dtype == jnp.float32

    # Tight check vs a reference using identical bf16-operand math, loose check
    # vs the pure-f32 reference (difference = bf16 input rounding only).
    ref_bf16 = model.reference_forward_bf16(x)
    ref_f32 = model.reference_forward(x)
    assert jnp.max(jnp.abs(out - ref_bf16)) < 2e-3
    assert jnp.max(jnp.abs(out - ref_f32)) < 1e-1

    print("KERNEL_OK")
</pallas_src>

<mosaic_0001>
module attributes {stable_mosaic.version = 11 : i64} {
  func.func @_fused_forward_kernel(%arg0: i32, %arg1: memref<36x512xbf16, #tpu.memory_space<vmem>>, %arg2: memref<48x128xf32, #tpu.memory_space<vmem>>, %arg3: memref<8x256x32xbf16, #tpu.memory_space<vmem>>, %arg4: memref<2x128xf32, #tpu.memory_space<vmem>>) attributes {dimension_semantics = [#tpu.dimension_semantics<arbitrary>], iteration_bounds = array<i64: 1>, scalar_prefetch = 0 : i64, scratch_operands = 0 : i64, tpu.core_type = #tpu.core_type<tc>, window_params = [{pipeline_mode = #tpu.pipeline_mode<synchronous>, transform_indices = @transform_0, window_bounds = array<i64: 36, 512>}, {pipeline_mode = #tpu.pipeline_mode<synchronous>, transform_indices = @transform_1, window_bounds = array<i64: 48, 128>}, {pipeline_mode = #tpu.pipeline_mode<synchronous>, transform_indices = @transform_2, window_bounds = array<i64: 8, 256, 32>}, {pipeline_mode = #tpu.pipeline_mode<synchronous>, transform_indices = @transform_3, window_bounds = array<i64: 2, 128>}]} {
    %c0 = arith.constant 0 : index
    %c0_0 = arith.constant 0 : index
    %0 = vector.load %arg2[%c0, %c0_0] : memref<48x128xf32, #tpu.memory_space<vmem>>, vector<8x36xf32>
    %c0_1 = arith.constant 0 : index
    %c36 = arith.constant 36 : index
    %1 = vector.load %arg2[%c0_1, %c36] : memref<48x128xf32, #tpu.memory_space<vmem>>, vector<8x1xf32>
    %c8 = arith.constant 8 : index
    %c0_2 = arith.constant 0 : index
    %2 = vector.load %arg2[%c8, %c0_2] : memref<48x128xf32, #tpu.memory_space<vmem>>, vector<32x10xf32>
    %c40 = arith.constant 40 : index
    %c0_3 = arith.constant 0 : index
    %3 = vector.load %arg2[%c40, %c0_3] : memref<48x128xf32, #tpu.memory_space<vmem>>, vector<1x32xf32>
    %c41 = arith.constant 41 : index
    %c0_4 = arith.constant 0 : index
    %4 = vector.load %arg2[%c41, %c0_4] : memref<48x128xf32, #tpu.memory_space<vmem>>, vector<1x10xf32>
    %5 = arith.truncf %0 : vector<8x36xf32> to vector<8x36xbf16>
    %c0_5 = arith.constant 0 : index
    %c0_6 = arith.constant 0 : index
    %6 = vector.load %arg1[%c0_5, %c0_6] : memref<36x512xbf16, #tpu.memory_space<vmem>>, vector<36x512xbf16>
    %cst = arith.constant dense<0.000000e+00> : vector<8x512xf32>
    %7 = tpu.matmul %5, %6, %cst {dimension_numbers = #tpu.dot_dimension_numbers<[1], [0], [0], [1], [0, 0, 1, 1], [], []>} : vector<8x36xbf16>, vector<36x512xbf16>, vector<8x512xf32> -> vector<8x512xf32>
    %8 = vector.broadcast %1 : vector<8x1xf32> to vector<8x512xf32>
    %9 = arith.addf %7, %8 : vector<8x512xf32>
    %cst_7 = arith.constant 0.000000e+00 : f32
    %10 = vector.broadcast %cst_7 : f32 to vector<8x512xf32>
    %11 = arith.maximumf %9, %10 : vector<8x512xf32>
    %12 = vector.shape_cast %11 : vector<8x512xf32> to vector<8x2x256xf32>
    %13 = arith.truncf %12 : vector<8x2x256xf32> to vector<8x2x256xbf16>
    %c0_8 = arith.constant 0 : index
    %c0_9 = arith.constant 0 : index
    %c0_10 = arith.constant 0 : index
    %14 = vector.load %arg3[%c0_8, %c0_9, %c0_10] : memref<8x256x32xbf16, #tpu.memory_space<vmem>>, vector<8x256x32xbf16>
    %cst_11 = arith.constant dense<0.000000e+00> : vector<8x2x32xf32>
    %15 = tpu.matmul %13, %14, %cst_11 {dimension_numbers = #tpu.dot_dimension_numbers<[2], [1], [1], [2], [0, 0, 0, 1, 1, 2], [0], [0]>} : vector<8x2x256xbf16>, vector<8x256x32xbf16>, vector<8x2x32xf32> -> vector<8x2x32xf32>
    %cst_12 = arith.constant dense<0.000000e+00> : vector<2x32xf32>
    %16 = vector.multi_reduction <add>, %15, %cst_12 [0] : vector<8x2x32xf32> to vector<2x32xf32>
    %17 = vector.broadcast %3 : vector<1x32xf32> to vector<2x32xf32>
    %18 = arith.addf %16, %17 : vector<2x32xf32>
    %cst_13 = arith.constant 0.000000e+00 : f32
    %19 = vector.broadcast %cst_13 : f32 to vector<2x32xf32>
    %20 = arith.maximumf %18, %19 : vector<2x32xf32>
    %cst_14 = arith.constant dense<0.000000e+00> : vector<2x10xf32>
    %21 = tpu.matmul %20, %2, %cst_14 {dimension_numbers = #tpu.dot_dimension_numbers<[1], [0], [0], [1], [0, 0, 1, 1], [], []>} : vector<2x32xf32>, vector<32x10xf32>, vector<2x10xf32> -> vector<2x10xf32>
    %22 = vector.broadcast %4 : vector<1x10xf32> to vector<2x10xf32>
    %23 = arith.addf %21, %22 : vector<2x10xf32>
    %cst_15 = arith.constant 0.000000e+00 : f32
    %24 = vector.broadcast %cst_15 : f32 to vector<2x86xf32>
    %25 = tpu.concatenate %20, %23, %24 in 1 : vector<2x32xf32>, vector<2x10xf32>, vector<2x86xf32> -> vector<2x128xf32>
    %c0_16 = arith.constant 0 : index
    %c0_17 = arith.constant 0 : index
    %26 = vector.load %arg4[%c0_16, %c0_17] : memref<2x128xf32, #tpu.memory_space<vmem>>, vector<2x128xf32>
    tpu.vector_store %arg4[%c0_16, %c0_17], %25 {strides = array<i32>} : memref<2x128xf32, #tpu.memory_space<vmem>>, vector<2x128xf32>,
    return
  }
  func.func @transform_0(%arg0: i32) -> (i32, i32) {
    %c0_i32 = arith.constant 0 : i32
    %c0_i32_0 = arith.constant 0 : i32
    %c0_i32_1 = arith.constant 0 : i32
    return %c0_i32, %c0_i32_0 : i32, i32
  }
  func.func @transform_1(%arg0: i32) -> (i32, i32) {
    %c0_i32 = arith.constant 0 : i32
    %c0_i32_0 = arith.constant 0 : i32
    %c0_i32_1 = arith.constant 0 : i32
    return %c0_i32, %c0_i32_0 : i32, i32
  }
  func.func @transform_2(%arg0: i32) -> (i32, i32, i32) {
    %c0_i32 = arith.constant 0 : i32
    %c0_i32_0 = arith.constant 0 : i32
    %c0_i32_1 = arith.constant 0 : i32
    %c0_i32_2 = arith.constant 0 : i32
    return %c0_i32, %c0_i32_0, %c0_i32_1 : i32, i32, i32
  }
  func.func @transform_3(%arg0: i32) -> (i32, i32) {
    %c0_i32 = arith.constant 0 : i32
    %c0_i32_0 = arith.constant 0 : i32
    %c0_i32_1 = arith.constant 0 : i32
    return %c0_i32, %c0_i32_0 : i32, i32
  }
}

</mosaic_0001>

<bundles_post_ra>
// kernel: forward.1
= control target key start
LH: loop header
LB: loop body
LE: loop exit
PB: predicated region body
PF: predicated region fallthrough
CT: control target
= control target key end

     0   :  { %v2293_v1 = vmov 0   ;;  %v2294_v3 = vmov 36   ;;  %vm92_vm0 = vcmask 1041408   ;;  %vm88_vm1 = vcmask 293888   ;;  %s2300_s21 = smov 32   ;;  %s2831_s0 = inlined_call_operand.vmem [shape: bf16[36,512], index: 0, kind: input, shape index: {}]   ;;  %s2832_s1 = inlined_call_operand.vmem [shape: f32[48,128], index: 1, kind: input, shape index: {}]   ;;  %s2833_s2 = inlined_call_operand.vmem [shape: bf16[8,256,32], index: 2, kind: input, shape index: {}]   ;;  %s2834_s3 = inlined_call_operand.vmem [shape: f32[2,128], index: 3, kind: output, shape index: {}]  }
   0x1   :  { %v2149_v0 = vld [vmem:[%s2831_s0 + $0x4] ss:$16 sps:$4 sm:$0xff]   ;;  %137 = vmatprep.mubr.bf16.mxu0 %v2293_v1  ;;  %178 = vmatprep.mubr.bf16.mxu1 %v2293_v1  ;;  %v2151_v2 = vld [vmem:[%s2831_s0 + $0xc] ss:$16 sps:$4 sm:$0xff]   ;;  %v2153_v4 = vld [vmem:[%s2831_s0] ss:$16 sps:$4 sm:$0xff]   ;;  %v195_v56 = vlaneseq }
   0x2   :  { %2148 = vset.pattern.permute.xlu0 %v2294_v3  ;;  %105 = vmatprep.subr.bf16.mxu0 %v2149_v0  ;;  %v2154_v5 = vld [vmem:[%s2831_s0 + $0x8] ss:$16 sps:$4 sm:$0xff]   ;;  %v2155_v6 = vld [vmem:[%s2831_s0 + $0x24] ss:$16 sps:$4 sm:$0xff]   ;;  %v2157_v7 = vld [vmem:[%s2831_s0 + $0x2c] ss:$16 sps:$4 sm:$0xff]  }
   0x3   :  { %146 = vmatprep.subr.bf16.mxu1 %v2151_v2  ;;  %106 = vmatpush1.bf16.msra.mxu0 %v2153_v4  ;;  %v2159_v8 = vld [vmem:[%s2831_s0 + $0x20] ss:$16 sps:$4 sm:$0xff]   ;;  %v2160_v9 = vld [vmem:[%s2831_s0 + $0x28] ss:$16 sps:$4 sm:$0xff]   ;;  %v2295_v54 = vmov 1983009808  }
   0x4   :  { %147 = vmatpush1.bf16.msra.mxu1 %v2154_v5  ;;  %107 = vmatprep.subr.bf16.mxu0 %v2155_v6  ;;  %v31_v10 = vld [vmem:[%s2831_s0 + $0x40] sm:$0x33]  ;;  %v32_v11 = vld [vmem:[%s2831_s0 + $0x48] sm:$0x33]  ;;  %v2173_v28 = vld [vmem:[%s2833_s2 + $0x50] sm:$0xff]   ;;  %v193_v55 = vunpack.c.l.s4 %v2295_v54  ;;  %v196_v60 = vshrl.u32 %v195_v56, 7 }
   0x5   :  { %148 = vmatprep.subr.bf16.mxu1 %v2157_v7  ;;  %v1804_v12 = vcombine.high %v31_v10, %v31_v10  ;;  %v1806_v13 = vcombine.high %v32_v11, %v32_v11  ;;  %v1803_v14 = vcombine.low %v31_v10, %v31_v10  ;;  %v1805_v15 = vcombine.low %v32_v11, %v32_v11  ;;  %v15_v16 = vld [vmem:[%s2832_s1] sm:$0xff]  ;;  %v2169_v24 = vld [vmem:[%s2833_s2 + $0x48] sm:$0xff]   ;;  %v2175_v29 = vld [vmem:[%s2833_s2 + $0xd0] sm:$0xff]  }
   0x6   :  { %35 = vperm.xlu0 %2148, %v15_v16   ;;  %v2165_v19 = vld [vmem:[%s2833_s2 + $0x40] sm:$0xff]   ;;  %v22_v22 = vpack.c.bf16 %v15_v16, %v15_v16  ;;  %v2171_v25 = vld [vmem:[%s2833_s2 + $0xc8] sm:$0xff]   ;;  %v2174_v30 = vld [vmem:[%s2833_s2 + $0x10] sm:$0xff]   ;;  %v2296_v57 = vmov 1934713408   ;;  %v194_v59 = vunpack.c.0.s8 %v193_v55  ;;  %vm2299_vm2 = vmmov 0  }
   0x7   :  { %108 = vmatpush1.bf16.msra.mxu0 %v2159_v8  ;;  %v94_v17 = vsel %vm92_vm0, %v1803_v14, 0  ;;  %v100_v18 = vsel %vm92_vm0, %v1805_v15, 0  ;;  %v2167_v20 = vld [vmem:[%s2833_s2 + $0xc0] sm:$0xff]   ;;  %v2170_v26 = vld [vmem:[%s2833_s2 + $0x8] sm:$0xff]   ;;  %v2176_v31 = vld [vmem:[%s2833_s2 + $0x90] sm:$0xff]   ;;  %v224_v58 = vunpack.c.l.s4 %v2296_v57  ;;  %vm1683_vm3 = vcmask 254976  }
   0x8   :  { %149 = vmatpush1.bf16.msra.mxu1 %v2160_v9  ;;  %1807 = vmatprep.subr.msk.bf16.mxu0 %vm92_vm0, %v1804_v12  ;;  %v2166_v21 = vld [vmem:[%s2833_s2] sm:$0xff]   ;;  %v2172_v27 = vld [vmem:[%s2833_s2 + $0x88] sm:$0xff]   ;;  %v2177_v32 = vld [vmem:[%s2833_s2 + $0x58] sm:$0xff]   ;;  %v197_v2 = vsub.s32 %v194_v59, %v196_v60  ;;  %vm1709_vm4 = vcmask 261120   ;;  %vm1788_vm5 = vcmask 343040  }
   0x9   :  { %1809 = vmatprep.subr.msk.bf16.mxu1 %vm92_vm0, %v1806_v13  ;;  %v2168_v23 = vld [vmem:[%s2833_s2 + $0x80] sm:$0xff]   ;;  %v2179_v33 = vld [vmem:[%s2833_s2 + $0xd8] sm:$0xff]   ;;  %v2185_v40 = vld [vmem:[%s2833_s2 + $0x68] sm:$0xff]   ;;  %v225_v0 = vunpack.c.0.s8 %v224_v58 }
   0xa   :  { %v2178_v34 = vld [vmem:[%s2833_s2 + $0x18] sm:$0xff]   ;;  %v2181_v36 = vld [vmem:[%s2833_s2 + $0x60] sm:$0xff]   ;;  %v2186_v41 = vld [vmem:[%s2833_s2 + $0x28] sm:$0xff]  }
   0xb   :  { %110 = vmatpush1.bf16.msra.mxu0 %v94_v17  ;;  %v2180_v35 = vld [vmem:[%s2833_s2 + $0x98] sm:$0xff]   ;;  %v2182_v37 = vld [vmem:[%s2833_s2 + $0x20] sm:$0xff]   ;;  %v2187_v42 = vld [vmem:[%s2833_s2 + $0xe8] sm:$0xff]   ;;  %v2460_v14 = vsub.s32 %v225_v0, %v196_v60  ;;  %v2297_v17 = vmov 0.0  }
   0xc   :  { %151 = vmatpush1.bf16.msra.mxu1 %v100_v18  ;;  %1942 = vmatprep.subr.bf16.mxu0 %v2165_v19  ;;  %v2183_v38 = vld [vmem:[%s2833_s2 + $0xe0] sm:$0xff]   ;;  %v2188_v43 = vld [vmem:[%s2833_s2 + $0xa8] sm:$0xff]   ;;  %v2189_v44 = vld [vmem:[%s2833_s2 + $0x70] sm:$0xff]  }
   0xd   :  { %1964 = vmatprep.subr.bf16.mxu1 %v2167_v20  ;;  %v2184_v39 = vld [vmem:[%s2833_s2 + $0xa0] sm:$0xff]   ;;  %v2190_v45 = vld [vmem:[%s2833_s2 + $0x30] sm:$0xff]   ;;  %v2193_v48 = vld [vmem:[%s2833_s2 + $0x78] sm:$0xff]  }
   0xe   :  { %1808 = vmatmul.mubr.msk.bf16.vlgmr.msra.gmra.mrb[0].mxu0 %vm88_vm1, %v22_v22  ;;  %v2191_v46 = vld [vmem:[%s2833_s2 + $0xf0] sm:$0xff]   ;;  %v2194_v49 = vld [vmem:[%s2833_s2 + $0x38] sm:$0xff]   ;;  %v2197_v52 = vld [vmem:[%s2833_s2 + $0x140] sm:$0xff]  }
   0xf   :  { %1810 = vmatmul.mubr.msk.bf16.vlgmr.msra.gmra.mrb[0].mxu1 %vm88_vm1, %v22_v22  ;;  %1943 = vmatpush3.bf16.msra.mxu0 %v2166_v21  ;;  %v2192_v47 = vld [vmem:[%s2833_s2 + $0xb0] sm:$0xff]   ;;  %v2195_v50 = vld [vmem:[%s2833_s2 + $0xf8] sm:$0xff]   ;;  %v2199_v53 = vld [vmem:[%s2833_s2 + $0x1c0] sm:$0xff]  }
  0x10   :  { %1965 = vmatpush3.bf16.msra.mxu1 %v2168_v23  ;;  %1944 = vmatprep.subr.bf16.mxu0 %v2169_v24  ;;  %v2196_v51 = vld [vmem:[%s2833_s2 + $0xb8] sm:$0xff]   ;;  %v2203_v55 = vld [vmem:[%s2833_s2 + $0x1c8] sm:$0xff]   ;;  %v2205_v58 = vld [vmem:[%s2833_s2 + $0x150] sm:$0xff]  }
  0x11   :  { %1966 = vmatprep.subr.bf16.mxu1 %v2171_v25  ;;  %v2202_v56 = vld [vmem:[%s2833_s2 + $0x108] sm:$0xff]   ;;  %v2207_v60 = vld [vmem:[%s2833_s2 + $0x1d0] sm:$0xff]   ;;  %v2211_v0 = vld [vmem:[%s2833_s2 + $0x1d8] sm:$0xff]  }
  0x12   :  { %v2204_v59 = vld [vmem:[%s2833_s2 + $0x188] sm:$0xff]  }
  0x13   :  { %1945 = vmatpush3.bf16.msra.mxu0 %v2170_v26 }
  0x14   :  { %1967 = vmatpush3.bf16.msra.mxu1 %v2172_v27  ;;  %1946 = vmatprep.subr.bf16.mxu0 %v2173_v28 }
  0x15   :  { %1968 = vmatprep.subr.bf16.mxu1 %v2175_v29 }
  0x17   :  { %1947 = vmatpush3.bf16.msra.mxu0 %v2174_v30 }
  0x18   :  { %1969 = vmatpush3.bf16.msra.mxu1 %v2176_v31  ;;  %1948 = vmatprep.subr.bf16.mxu0 %v2177_v32 }
  0x19   :  { %1970 = vmatprep.subr.bf16.mxu1 %v2179_v33 }
  0x1b   :  { %1949 = vmatpush3.bf16.msra.mxu0 %v2178_v34 }
  0x1c   :  { %1971 = vmatpush3.bf16.msra.mxu1 %v2180_v35  ;;  %1950 = vmatprep.subr.bf16.mxu0 %v2181_v36 }
  0x1d   :  { %1972 = vmatprep.subr.bf16.mxu1 %v2183_v38 }
  0x1f   :  { %1951 = vmatpush3.bf16.msra.mxu0 %v2182_v37 }
  0x20   :  { %1973 = vmatpush3.bf16.msra.mxu1 %v2184_v39  ;;  %1952 = vmatprep.subr.bf16.mxu0 %v2185_v40 }
  0x21   :  { %1974 = vmatprep.subr.bf16.mxu1 %v2187_v42 }
  0x23   :  { %1953 = vmatpush3.bf16.msra.mxu0 %v2186_v41 }
  0x24   :  { %1975 = vmatpush3.bf16.msra.mxu1 %v2188_v43  ;;  %1954 = vmatprep.subr.bf16.mxu0 %v2189_v44 }
  0x25   :  { %1976 = vmatprep.subr.bf16.mxu1 %v2191_v46 }
  0x27   :  { %1955 = vmatpush3.bf16.msra.mxu0 %v2190_v45  ;;  %v2198_v45 = vld [vmem:[%s2833_s2 + $0x100] sm:$0xff]  }
  0x28   :  { %1977 = vmatpush3.bf16.msra.mxu1 %v2192_v47  ;;  %1956 = vmatprep.subr.bf16.mxu0 %v2193_v48 }
  0x29   :  { %1978 = vmatprep.subr.bf16.mxu1 %v2195_v50  ;;  %v2200_v50 = vld [vmem:[%s2833_s2 + $0x180] sm:$0xff]  }
  0x2b   :  { %1957 = vmatpush3.bf16.msra.mxu0 %v2194_v49 }
  0x2c   :  { %1979 = vmatpush3.bf16.msra.mxu1 %v2196_v51  ;;  %1986 = vmatprep.subr.bf16.mxu0 %v2197_v52  ;;  %v2201_v51 = vld [vmem:[%s2833_s2 + $0x148] sm:$0xff]  }
  0x2d   :  { %2008 = vmatprep.subr.bf16.mxu1 %v2199_v53 }
  0x85   :  { %v36_v61 = vpop.permute.xlu0 %35 }
  0xe1   :  { %v139_v62 = vpop.f32.mrb[0].mxu0 }
  0xe2   :  { %v180_v63 = vpop.f32.mrb[0].mxu1  ;;  %v140_v1 = vadd.f32 %v139_v62, %v36_v61  ;;  %v141_v4 = vpop.f32.mrb[1].mxu0  ;;  %v2209_v62 = vld [vmem:[%s2833_s2 + $0x158] sm:$0xff]  }
  0xe3   :  { %v181_v3 = vadd.f32 %v180_v63, %v36_v61  ;;  %v182_v5 = vpop.f32.mrb[1].mxu1  ;;  %v142_v6 = vadd.f32 %v141_v4, %v36_v61  ;;  %v143_v8 = vpop.f32.mrb[2].mxu0  ;;  %v2208_v63 = vld [vmem:[%s2833_s2 + $0x190] sm:$0xff]   ;;  %v2215_v4 = vld [vmem:[%s2833_s2 + $0x1e0] sm:$0xff]  }
  0xe4   :  { %v183_v7 = vadd.f32 %v182_v5, %v36_v61  ;;  %v184_v9 = vpop.f32.mrb[2].mxu1  ;;  %v187_v10 = vmax.f32 %v140_v1, 0.0  ;;  %v144_v12 = vpop.f32.mrb[3].mxu0  ;;  %v2206_v61 = vld [vmem:[%s2833_s2 + $0x110] sm:$0xff]   ;;  %v2210_v1 = vld [vmem:[%s2833_s2 + $0x118] sm:$0xff]   ;;  %v2214_v5 = vld [vmem:[%s2833_s2 + $0x120] sm:$0xff]  }
  0xe5   :  { %v189_v11 = vmax.f32 %v181_v3, 0.0  ;;  %v185_v13 = vpop.f32.mrb[3].mxu1  ;;  %v188_v15 = vmax.f32 %v142_v6, 0.0  ;;  %v2212_v3 = vld [vmem:[%s2833_s2 + $0x198] sm:$0xff]   ;;  %v2217_v6 = vld [vmem:[%s2833_s2 + $0x168] sm:$0xff]   ;;  %v2223_v12 = vld [vmem:[%s2833_s2 + $0x1f0] sm:$0xff]  }
  0xe6   :  { %v190_v16 = vmax.f32 %v183_v7, 0.0  ;;  %v191_v18 = vcombine.high %v187_v10, %v2297_v17  ;;  %v2463_v19 = vrot.slane %v187_v10, %v197_v2  ;;  %v2216_v7 = vld [vmem:[%s2833_s2 + $0x1a0] sm:$0xff]   ;;  %v2219_v8 = vld [vmem:[%s2833_s2 + $0x1e8] sm:$0xff]   ;;  %v2221_v10 = vld [vmem:[%s2833_s2 + $0x170] sm:$0xff]  }
  0xe7   :  { %v206_v20 = vcombine.high %v189_v11, %v2297_v17  ;;  %v2466_v21 = vrot.slane %v189_v11, %v197_v2  ;;  %v257_v22 = vcombine.high %v188_v15, %v2297_v17  ;;  %v264_v23 = vrot.slane %v188_v15, %v197_v2  ;;  %v2218_v9 = vld [vmem:[%s2833_s2 + $0x128] sm:$0xff]   ;;  %v2222_v13 = vld [vmem:[%s2833_s2 + $0x130] sm:$0xff]   ;;  %v2225_v15 = vld [vmem:[%s2833_s2 + $0x178] sm:$0xff]  }
  0xe8   :  { %v272_v24 = vcombine.high %v190_v16, %v2297_v17  ;;  %v279_v25 = vrot.slane %v190_v16, %v197_v2  ;;  %v205_v26 = vrot.slane %v191_v18, %v197_v2  ;;  %v2220_v11 = vld [vmem:[%s2833_s2 + $0x1a8] sm:$0xff]   ;;  %v2224_v16 = vld [vmem:[%s2833_s2 + $0x1b0] sm:$0xff]  }
  0xe9   :  { %v220_v27 = vrot.slane %v206_v20, %v197_v2  ;;  %v221_v28 = vcombine.low %v2463_v19, %v2466_v21  ;;  %v222_v29 = vcombine.high %v2463_v19, %v2466_v21  ;;  %v2474_v30 = vrot.slane %v257_v22, %v197_v2  ;;  %v2227_v20 = vld [vmem:[%s2833_s2 + $0x1f8] sm:$0xff]   ;;  %v2229_v19 = vld [vmem:[%s2833_s2 + $0x240] sm:$0xff]  }
  0xea   :  { %v2476_v31 = vrot.slane %v272_v24, %v197_v2  ;;  %v287_v32 = vcombine.low %v264_v23, %v279_v25  ;;  %v288_v33 = vcombine.high %v264_v23, %v279_v25  ;;  %v2213_v2 = vld [vmem:[%s2833_s2 + $0x160] sm:$0xff]   ;;  %v2226_v22 = vld [vmem:[%s2833_s2 + $0x138] sm:$0xff]  }
  0xeb   :  { %v229_v34 = vrot.slane %v221_v28, %v2460_v14  ;;  %v237_v35 = vcombine.low %v205_v26, %v220_v27  ;;  %v238_v36 = vcombine.high %v205_v26, %v220_v27  ;;  %v236_v18 = vrot.slane %v222_v29, %v2460_v14  ;;  %v2228_v21 = vld [vmem:[%s2833_s2 + $0x1b8] sm:$0xff]   ;;  %v2231_v25 = vld [vmem:[%s2833_s2 + $0x2c0] sm:$0xff]   ;;  %v2233_v28 = vld [vmem:[%s2833_s2 + $0x248] sm:$0xff]  }
  0xec   :  { %v303_v37 = vcombine.low %v2474_v30, %v2476_v31  ;;  %v304_v38 = vcombine.high %v2474_v30, %v2476_v31  ;;  %v295_v39 = vrot.slane %v287_v32, %v2460_v14  ;;  %v302_v40 = vrot.slane %v288_v33, %v2460_v14  ;;  %v2232_v30 = vld [vmem:[%s2833_s2 + $0x280] sm:$0xff]   ;;  %v2235_v32 = vld [vmem:[%s2833_s2 + $0x2c8] sm:$0xff]  }
  0xed   :  { %v2486_v41 = vrot.slane %v237_v35, %v2460_v14  ;;  %v2489_v42 = vrot.slane %v238_v36, %v2460_v14  ;;  %v253_v43 = vcombine.high %v229_v34, %v2297_v17  ;;  %v323_v47 = vpack.c.bf16 %v229_v34, %v229_v34  ;;  %v2234_v34 = vld [vmem:[%s2833_s2 + $0x208] sm:$0xff]   ;;  %v2237_v35 = vld [vmem:[%s2833_s2 + $0x250] sm:$0xff]  }
  0xee   :  { %v324_v44 = vpack.c.bf16 %v295_v39, %v295_v39  ;;  %v319_v46 = vcombine.high %v295_v39, %v2297_v17  ;;  %v320_v48 = vcombine.high %v302_v40, %v2297_v17  ;;  %v2504_v52 = vrot.slane %v304_v38, %v2460_v14  ;;  %v2236_v36 = vld [vmem:[%s2833_s2 + $0x288] sm:$0xff]   ;;  %v2238_v38 = vld [vmem:[%s2833_s2 + $0x210] sm:$0xff]   ;;  %v2241_v39 = vld [vmem:[%s2833_s2 + $0x258] sm:$0xff]  }
  0xef   :  { %v328_v53 = vpack.c.bf16 %v302_v40, %v302_v40  ;;  %v325_v54 = vpack.c.bf16 %v253_v43, %v253_v43  ;;  %v311_v23 = vrot.slane %v303_v37, %v2460_v14  ;;  %v254_v24 = vcombine.high %v236_v18, %v2297_v17  ;;  %v2230_v14 = vld [vmem:[%s2833_s2 + $0x200] sm:$0xff]   ;;  %v2239_v37 = vld [vmem:[%s2833_s2 + $0x2d0] sm:$0xff]   ;;  %v2243_v43 = vld [vmem:[%s2833_s2 + $0x2d8] sm:$0xff]  }
  0xf0   :  { %723 = vmatprep.mubr.bf16.mxu0 %v324_v44  ;;  %v326_v49 = vpack.c.bf16 %v319_v46, %v319_v46  ;;  %v330_v57 = vpack.c.bf16 %v320_v48, %v320_v48  ;;  %v327_v27 = vpack.c.bf16 %v236_v18, %v236_v18  ;;  %v2240_v40 = vld [vmem:[%s2833_s2 + $0x290] sm:$0xff]   ;;  %v2242_v44 = vld [vmem:[%s2833_s2 + $0x218] sm:$0xff]   ;;  %v2246_v48 = vld [vmem:[%s2833_s2 + $0x220] sm:$0xff]  }
  0xf1   :  { %724 = vmatmul.mubr.bf16.vlgmr.msra.gmra.mrb[4].mxu0 %v323_v47  ;;  %v321_v26 = vcombine.high %v311_v23, %v2297_v17  ;;  %v332_v29 = vpack.c.bf16 %v311_v23, %v311_v23  ;;  %v329_v31 = vpack.c.bf16 %v254_v24, %v254_v24  ;;  %v2244_v46 = vld [vmem:[%s2833_s2 + $0x298] sm:$0xff]   ;;  %v2247_v47 = vld [vmem:[%s2833_s2 + $0x2e0] sm:$0xff]   ;;  %v2281_v24 = vld [vmem:[%s2833_s2 + $0x368] sm:$0xff]  }
  0xf2   :  { %1987 = vmatpush3.bf16.msra.mxu0 %v2198_v45  ;;  %859 = vmatprep.mubr.bf16.mxu1 %v326_v49  ;;  %v2245_v45 = vld [vmem:[%s2833_s2 + $0x260] sm:$0xff]   ;;  %v2249_v49 = vld [vmem:[%s2833_s2 + $0x268] sm:$0xff]   ;;  %v2275_v18 = vld [vmem:[%s2833_s2 + $0x3d8] sm:$0xff]  }
  0xf3   :  { %995 = vmatprep.mubr.bf16.mxu0 %v328_v53  ;;  %860 = vmatmul.mubr.bf16.vlgmr.msra.gmra.mrb[4].mxu1 %v325_v54  ;;  %v334_v33 = vpack.c.bf16 %v321_v26, %v321_v26  ;;  %v2250_v53 = vld [vmem:[%s2833_s2 + $0x228] sm:$0xff]   ;;  %v2253_v54 = vld [vmem:[%s2833_s2 + $0x270] sm:$0xff]   ;;  %v2276_v23 = vld [vmem:[%s2833_s2 + $0x398] sm:$0xff]  }
  0xf4   :  { %2009 = vmatpush3.bf16.msra.mxu1 %v2200_v50  ;;  %1988 = vmatprep.subr.bf16.mxu0 %v2201_v51  ;;  %v2248_v50 = vld [vmem:[%s2833_s2 + $0x2a0] sm:$0xff]   ;;  %v2251_v51 = vld [vmem:[%s2833_s2 + $0x2e8] sm:$0xff]  }
  0xf5   :  { %1131 = vmatprep.mubr.bf16.mxu1 %v330_v57  ;;  %2010 = vmatprep.subr.bf16.mxu1 %v2203_v55  ;;  %v2252_v55 = vld [vmem:[%s2833_s2 + $0x2a8] sm:$0xff]   ;;  %v2254_v57 = vld [vmem:[%s2833_s2 + $0x230] sm:$0xff]  }
  0xf6   :  { %1989 = vmatpush3.bf16.msra.mxu0 %v2202_v56  ;;  %v2255_v56 = vld [vmem:[%s2833_s2 + $0x2f0] sm:$0xff]   ;;  %v2282_v26 = vld [vmem:[%s2833_s2 + $0x328] sm:$0xff]  }
  0xf7   :  { %1990 = vmatprep.subr.bf16.mxu0 %v2205_v58  ;;  %v2257_v58 = vld [vmem:[%s2833_s2 + $0x278] sm:$0xff]  }
  0xf8   :  { %2011 = vmatpush3.bf16.msra.mxu1 %v2204_v59  ;;  %v2256_v59 = vld [vmem:[%s2833_s2 + $0x2b0] sm:$0xff]  }
  0xf9   :  { %2012 = vmatprep.subr.bf16.mxu1 %v2207_v60  ;;  %v2259_v60 = vld [vmem:[%s2833_s2 + $0x2f8] sm:$0xff]  }
  0xfa   :  { %1991 = vmatpush3.bf16.msra.mxu0 %v2206_v61  ;;  %v2258_v61 = vld [vmem:[%s2833_s2 + $0x238] sm:$0xff]  }
  0xfb   :  { %1992 = vmatprep.subr.bf16.mxu0 %v2209_v62  ;;  %v2261_v62 = vld [vmem:[%s2833_s2 + $0x340] sm:$0xff]  }
  0xfc   :  { %2013 = vmatpush3.bf16.msra.mxu1 %v2208_v63  ;;  %v2260_v63 = vld [vmem:[%s2833_s2 + $0x2b8] sm:$0xff]  }
  0xfd   :  { %2014 = vmatprep.subr.bf16.mxu1 %v2211_v0  ;;  %v255_v0 = vcombine.high %v2486_v41, %v2297_v17 }
  0xfe   :  { %1993 = vmatpush3.bf16.msra.mxu0 %v2210_v1  ;;  %v2263_v1 = vld [vmem:[%s2833_s2 + $0x3c0] sm:$0xff]  }
  0xff   :  { %1994 = vmatprep.subr.bf16.mxu0 %v2213_v2  ;;  %v2262_v2 = vld [vmem:[%s2833_s2 + $0x300] sm:$0xff]  }
 0x100   :  { %2015 = vmatpush3.bf16.msra.mxu1 %v2212_v3  ;;  %v322_v3 = vcombine.high %v2504_v52, %v2297_v17 }
 0x101   :  { %2016 = vmatprep.subr.bf16.mxu1 %v2215_v4  ;;  %v331_v4 = vpack.c.bf16 %v2486_v41, %v2486_v41  ;;  %v2267_v41 = vld [vmem:[%s2833_s2 + $0x3c8] sm:$0xff]  }
 0x102   :  { %1995 = vmatpush3.bf16.msra.mxu0 %v2214_v5  ;;  %v2265_v5 = vld [vmem:[%s2833_s2 + $0x348] sm:$0xff]  }
 0x103   :  { %1996 = vmatprep.subr.bf16.mxu0 %v2217_v6  ;;  %v336_v6 = vpack.c.bf16 %v2504_v52, %v2504_v52  ;;  %v2269_v52 = vld [vmem:[%s2833_s2 + $0x350] sm:$0xff]  }
 0x104   :  { %2017 = vmatpush3.bf16.msra.mxu1 %v2216_v7  ;;  %v2264_v7 = vld [vmem:[%s2833_s2 + $0x380] sm:$0xff]  }
 0x105   :  { %2018 = vmatprep.subr.bf16.mxu1 %v2219_v8  ;;  %v333_v8 = vpack.c.bf16 %v255_v0, %v255_v0 }
 0x106   :  { %1997 = vmatpush3.bf16.msra.mxu0 %v2218_v9  ;;  %v338_v9 = vpack.c.bf16 %v322_v3, %v322_v3 }
 0x107   :  { %1998 = vmatprep.subr.bf16.mxu0 %v2221_v10  ;;  %v2266_v10 = vld [vmem:[%s2833_s2 + $0x308] sm:$0xff]  }
 0x108   :  { %2019 = vmatpush3.bf16.msra.mxu1 %v2220_v11  ;;  %v2268_v11 = vld [vmem:[%s2833_s2 + $0x388] sm:$0xff]  }
 0x109   :  { %2020 = vmatprep.subr.bf16.mxu1 %v2223_v12  ;;  %v2271_v12 = vld [vmem:[%s2833_s2 + $0x3d0] sm:$0xff]  }
 0x10a   :  { %1999 = vmatpush3.bf16.msra.mxu0 %v2222_v13  ;;  %v2270_v13 = vld [vmem:[%s2833_s2 + $0x310] sm:$0xff]  }
 0x10b   :  { %2000 = vmatprep.subr.bf16.mxu0 %v2225_v15  ;;  %v2273_v15 = vld [vmem:[%s2833_s2 + $0x358] sm:$0xff]  }
 0x10c   :  { %2021 = vmatpush3.bf16.msra.mxu1 %v2224_v16  ;;  %v2272_v16 = vld [vmem:[%s2833_s2 + $0x390] sm:$0xff]  }
 0x10d   :  { %2022 = vmatprep.subr.bf16.mxu1 %v2227_v20  ;;  %v2274_v20 = vld [vmem:[%s2833_s2 + $0x318] sm:$0xff]  }
 0x10e   :  { %2001 = vmatpush3.bf16.msra.mxu0 %v2226_v22  ;;  %v2277_v22 = vld [vmem:[%s2833_s2 + $0x360] sm:$0xff]  }
 0x10f   :  { %2030 = vmatprep.subr.bf16.mxu0 %v2229_v19  ;;  %v2279_v19 = vld [vmem:[%s2833_s2 + $0x3e0] sm:$0xff]  }
 0x110   :  { %2023 = vmatpush3.bf16.msra.mxu1 %v2228_v21  ;;  %v2278_v21 = vld [vmem:[%s2833_s2 + $0x320] sm:$0xff]  }
 0x111   :  { %996 = vmatmul.mubr.bf16.vlgmr.msra.gmra.mrb[8].mxu0 %v327_v27  ;;  %2052 = vmatprep.subr.bf16.mxu1 %v2231_v25  ;;  %v2280_v25 = vld [vmem:[%s2833_s2 + $0x3a0] sm:$0xff]   ;;  %v2285_v27 = vld [vmem:[%s2833_s2 + $0x370] sm:$0xff]  }
 0x112   :  { %2031 = vmatpush3.bf16.msra.mxu0 %v2230_v14  ;;  %1267 = vmatprep.mubr.bf16.mxu0 %v332_v29  ;;  %v2283_v14 = vld [vmem:[%s2833_s2 + $0x3e8] sm:$0xff]   ;;  %v2287_v29 = vld [vmem:[%s2833_s2 + $0x3f0] sm:$0xff]  }
 0x113   :  { %1132 = vmatmul.mubr.bf16.vlgmr.msra.gmra.mrb[8].mxu1 %v329_v31  ;;  %2032 = vmatprep.subr.bf16.mxu0 %v2233_v28  ;;  %v2284_v28 = vld [vmem:[%s2833_s2 + $0x3a8] sm:$0xff]   ;;  %v2289_v31 = vld [vmem:[%s2833_s2 + $0x378] sm:$0xff]  }
 0x114   :  { %2053 = vmatpush3.bf16.msra.mxu1 %v2232_v30  ;;  %1403 = vmatprep.mubr.bf16.mxu1 %v334_v33  ;;  %v2286_v30 = vld [vmem:[%s2833_s2 + $0x330] sm:$0xff]   ;;  %v2291_v33 = vld [vmem:[%s2833_s2 + $0x3f8] sm:$0xff]  }
 0x115   :  { %2054 = vmatprep.subr.bf16.mxu1 %v2235_v32  ;;  %v2288_v32 = vld [vmem:[%s2833_s2 + $0x3b0] sm:$0xff]  }
 0x116   :  { %2033 = vmatpush3.bf16.msra.mxu0 %v2234_v34  ;;  %v2290_v34 = vld [vmem:[%s2833_s2 + $0x338] sm:$0xff]  }
 0x117   :  { %2034 = vmatprep.subr.bf16.mxu0 %v2237_v35  ;;  %v2292_v35 = vld [vmem:[%s2833_s2 + $0x3b8] sm:$0xff]  }
 0x118   :  { %2055 = vmatpush3.bf16.msra.mxu1 %v2236_v36  ;;  %v256_v36 = vcombine.high %v2489_v42, %v2297_v17 }
 0x119   :  { %2056 = vmatprep.subr.bf16.mxu1 %v2239_v37  ;;  %v335_v37 = vpack.c.bf16 %v2489_v42, %v2489_v42  ;;  %v18_v42 = vld [vmem:[%s2832_s1 + $0x18] sm:$0xff] }
 0x11a   :  { %2035 = vmatpush3.bf16.msra.mxu0 %v2238_v38  ;;  %v337_v38 = vpack.c.bf16 %v256_v36, %v256_v36 }
 0x11b   :  { %2036 = vmatprep.subr.bf16.mxu0 %v2241_v39  ;;  %v16_v39 = vld [vmem:[%s2832_s1 + $0x8] sm:$0xff] }
 0x11c   :  { %2057 = vmatpush3.bf16.msra.mxu1 %v2240_v40  ;;  %v17_v40 = vld [vmem:[%s2832_s1 + $0x10] sm:$0xff] }
 0x11d   :  { %2058 = vmatprep.subr.bf16.mxu1 %v2243_v43  ;;  %v2135_v43 = vpack.c.bf16 %v17_v40, %v16_v39  ;;  %v1940_v40 = vld [vmem:[%s2832_s1 + $0x29] ss:$0 sm:$0xff] }
 0x11e   :  { %2037 = vmatpush3.bf16.msra.mxu0 %v2242_v44  ;;  %v2298_v44 = vmov 0.0|0.0  }
 0x11f   :  { %2038 = vmatprep.subr.bf16.mxu0 %v2245_v45  ;;  %v19_v45 = vld [vmem:[%s2832_s1 + $0x20] sm:$0xff] }
 0x120   :  { %2059 = vmatpush3.bf16.msra.mxu1 %v2244_v46  ;;  %v2138_v46 = vpack.c.bf16 %v19_v45, %v18_v42 }
 0x121   :  { %2060 = vmatprep.subr.bf16.mxu1 %v2247_v47 }
 0x122   :  { %2039 = vmatpush3.bf16.msra.mxu0 %v2246_v48 }
 0x123   :  { %2040 = vmatprep.subr.bf16.mxu0 %v2249_v49 }
 0x124   :  { %2061 = vmatpush3.bf16.msra.mxu1 %v2248_v50 }
 0x125   :  { %2062 = vmatprep.subr.bf16.mxu1 %v2251_v51 }
 0x126   :  { %2041 = vmatpush3.bf16.msra.mxu0 %v2250_v53 }
 0x127   :  { %2042 = vmatprep.subr.bf16.mxu0 %v2253_v54 }
 0x128   :  { %2063 = vmatpush3.bf16.msra.mxu1 %v2252_v55 }
 0x129   :  { %2064 = vmatprep.subr.bf16.mxu1 %v2255_v56 }
 0x12a   :  { %2043 = vmatpush3.bf16.msra.mxu0 %v2254_v57 }
 0x12b   :  { %2044 = vmatprep.subr.bf16.mxu0 %v2257_v58 }
 0x12c   :  { %2065 = vmatpush3.bf16.msra.mxu1 %v2256_v59 }
 0x12d   :  { %2066 = vmatprep.subr.bf16.mxu1 %v2259_v60 }
 0x12e   :  { %2045 = vmatpush3.bf16.msra.mxu0 %v2258_v61 }
 0x12f   :  { %2074 = vmatprep.subr.bf16.mxu0 %v2261_v62 }
 0x130   :  { %2067 = vmatpush3.bf16.msra.mxu1 %v2260_v63 }
 0x131   :  { %1268 = vmatmul.mubr.bf16.vlgmr.msra.gmra.mrb[12].mxu0 %v331_v4  ;;  %2096 = vmatprep.subr.bf16.mxu1 %v2263_v1 }
 0x132   :  { %2075 = vmatpush3.bf16.msra.mxu0 %v2262_v2  ;;  %1539 = vmatprep.mubr.bf16.mxu0 %v336_v6 }
 0x133   :  { %1404 = vmatmul.mubr.bf16.vlgmr.msra.gmra.mrb[12].mxu1 %v333_v8  ;;  %2076 = vmatprep.subr.bf16.mxu0 %v2265_v5 }
 0x134   :  { %2097 = vmatpush3.bf16.msra.mxu1 %v2264_v7  ;;  %1675 = vmatprep.mubr.bf16.mxu1 %v338_v9 }
 0x135   :  { %2098 = vmatprep.subr.bf16.mxu1 %v2267_v41 }
 0x136   :  { %2077 = vmatpush3.bf16.msra.mxu0 %v2266_v10 }
 0x137   :  { %2078 = vmatprep.subr.bf16.mxu0 %v2269_v52 }
 0x138   :  { %2099 = vmatpush3.bf16.msra.mxu1 %v2268_v11 }
 0x139   :  { %2100 = vmatprep.subr.bf16.mxu1 %v2271_v12 }
 0x13a   :  { %2079 = vmatpush3.bf16.msra.mxu0 %v2270_v13 }
 0x13b   :  { %2080 = vmatprep.subr.bf16.mxu0 %v2273_v15 }
 0x13c   :  { %2101 = vmatpush3.bf16.msra.mxu1 %v2272_v16 }
 0x13d   :  { %2102 = vmatprep.subr.bf16.mxu1 %v2275_v18 }
 0x13e   :  { %2081 = vmatpush3.bf16.msra.mxu0 %v2274_v20 }
 0x13f   :  { %2082 = vmatprep.subr.bf16.mxu0 %v2277_v22 }
 0x140   :  { %2103 = vmatpush3.bf16.msra.mxu1 %v2276_v23 }
 0x141   :  { %2104 = vmatprep.subr.bf16.mxu1 %v2279_v19 }
 0x142   :  { %2083 = vmatpush3.bf16.msra.mxu0 %v2278_v21 }
 0x143   :  { %2084 = vmatprep.subr.bf16.mxu0 %v2281_v24 }
 0x144   :  { %2105 = vmatpush3.bf16.msra.mxu1 %v2280_v25 }
 0x145   :  { %2106 = vmatprep.subr.bf16.mxu1 %v2283_v14 }
 0x146   :  { %2085 = vmatpush3.bf16.msra.mxu0 %v2282_v26 }
 0x147   :  { %2086 = vmatprep.subr.bf16.mxu0 %v2285_v27 }
 0x148   :  { %2107 = vmatpush3.bf16.msra.mxu1 %v2284_v28 }
 0x149   :  { %2108 = vmatprep.subr.bf16.mxu1 %v2287_v29 }
 0x14a   :  { %2087 = vmatpush3.bf16.msra.mxu0 %v2286_v30 }
 0x14b   :  { %2088 = vmatprep.subr.bf16.mxu0 %v2289_v31 }
 0x14c   :  { %2109 = vmatpush3.bf16.msra.mxu1 %v2288_v32 }
 0x14d   :  { %2110 = vmatprep.subr.bf16.mxu1 %v2291_v33 }
 0x14e   :  { %2089 = vmatpush3.bf16.msra.mxu0 %v2290_v34 }
 0x14f   :  { %2134 = vmatprep.subr.bf16.mxu0 %v2298_v44 }
 0x150   :  { %2111 = vmatpush3.bf16.msra.mxu1 %v2292_v35  ;;  %v1939_v35 = vld [vmem:[%s2832_s1 + $0x28] ss:$0 sm:$0xff] }
 0x151   :  { %1540 = vmatmul.mubr.bf16.vlgmr.msra.gmra.mrb[16].mxu0 %v335_v37 }
 0x152   :  { %2136 = vmatpush3.bf16.msra.mxu0 %v2135_v43  ;;  %2131 = vmatprep.mubr.msk.f32.mxu0 %vm2299_vm2, %v2297_v17 }
 0x153   :  { %1676 = vmatmul.mubr.bf16.vlgmr.msra.gmra.mrb[16].mxu1 %v337_v38  ;;  %2137 = vmatprep.subr.bf16.mxu0 %v2298_v44 }
 0x156   :  { %2139 = vmatpush3.bf16.msra.mxu0 %v2138_v46 }
 0x1c4   :  { %v1958_v47 = vpop.f32.mrb[4].mxu0 }
 0x1c5   :  { %v1959_v48 = vpop.f32.mrb[5].mxu0 }
 0x1c6   :  { %v1960_v49 = vadd.f32 %v1959_v48, %v1958_v47  ;;  %v1961_v50 = vpop.f32.mrb[6].mxu0  ;;  %v1980_v51 = vpop.f32.mrb[4].mxu1 }
 0x1c7   :  { %v1962_v53 = vpop.f32.mrb[7].mxu0  ;;  %v1981_v54 = vpop.f32.mrb[5].mxu1 }
 0x1c8   :  { %v1982_v55 = vadd.f32 %v1981_v54, %v1980_v51  ;;  %v1983_v56 = vpop.f32.mrb[6].mxu1  ;;  %v1684_v58 = vsel %vm1683_vm3, %v1960_v49, 0.0 }
 0x1c9   :  { %v1984_v57 = vpop.f32.mrb[7].mxu1 }
 0x1ca   :  { %v1685_v59 = vsel %vm1683_vm3, %v1982_v55, 0.0 }
 0x1cb   :  { %v1686_v60 = vadd.f32 %v1685_v59, %v1684_v58 }
 0x1e4   :  { %v2002_v61 = vpop.f32.mrb[8].mxu0 }
 0x1e5   :  { %v2003_v62 = vpop.f32.mrb[9].mxu0 }
 0x1e6   :  { %v2004_v17 = vadd.f32 %v2003_v62, %v2002_v61  ;;  %v2005_v63 = vpop.f32.mrb[10].mxu0  ;;  %v2024_v0 = vpop.f32.mrb[8].mxu1 }
 0x1e7   :  { %v2006_v1 = vpop.f32.mrb[11].mxu0  ;;  %v2025_v2 = vpop.f32.mrb[9].mxu1 }
 0x1e8   :  { %v1687_v3 = vsel %vm1683_vm3, %v2004_v17, 0.0  ;;  %v2026_v4 = vadd.f32 %v2025_v2, %v2024_v0  ;;  %v2027_v5 = vpop.f32.mrb[10].mxu1 }
 0x1e9   :  { %v1688_v6 = vadd.f32 %v1687_v3, %v1686_v60  ;;  %v2028_v7 = vpop.f32.mrb[11].mxu1 }
 0x1ea   :  { %v1689_v8 = vsel %vm1683_vm3, %v2026_v4, 0.0 }
 0x1eb   :  { %v1690_v41 = vadd.f32 %v1689_v8, %v1688_v6 }
 0x204   :  { %v2046_v9 = vpop.f32.mrb[12].mxu0 }
 0x205   :  { %v2047_v10 = vpop.f32.mrb[13].mxu0 }
 0x206   :  { %v2048_v52 = vadd.f32 %v2047_v10, %v2046_v9  ;;  %v2049_v11 = vpop.f32.mrb[14].mxu0  ;;  %v2068_v12 = vpop.f32.mrb[12].mxu1 }
 0x207   :  { %v2050_v13 = vpop.f32.mrb[15].mxu0  ;;  %v2069_v15 = vpop.f32.mrb[13].mxu1 }
 0x208   :  { %v1691_v16 = vsel %vm1683_vm3, %v2048_v52, 0.0  ;;  %v2070_v18 = vadd.f32 %v2069_v15, %v2068_v12  ;;  %v2071_v20 = vpop.f32.mrb[14].mxu1 }
 0x209   :  { %v1692_v22 = vadd.f32 %v1691_v16, %v1690_v41  ;;  %v2072_v23 = vpop.f32.mrb[15].mxu1 }
 0x20a   :  { %v1693_v19 = vsel %vm1683_vm3, %v2070_v18, 0.0 }
 0x20b   :  { %v1694_v21 = vadd.f32 %v1693_v19, %v1692_v22 }
 0x224   :  { %v2090_v24 = vpop.f32.mrb[16].mxu0 }
 0x225   :  { %v2091_v25 = vpop.f32.mrb[17].mxu0 }
 0x226   :  { %v2092_v14 = vadd.f32 %v2091_v25, %v2090_v24  ;;  %v2093_v26 = vpop.f32.mrb[18].mxu0  ;;  %v2112_v27 = vpop.f32.mrb[16].mxu1 }
 0x227   :  { %v2094_v28 = vpop.f32.mrb[19].mxu0  ;;  %v2113_v29 = vpop.f32.mrb[17].mxu1 }
 0x228   :  { %v1695_v30 = vsel %vm1683_vm3, %v2092_v14, 0.0  ;;  %v2114_v31 = vadd.f32 %v2113_v29, %v2112_v27  ;;  %v2115_v32 = vpop.f32.mrb[18].mxu1 }
 0x229   :  { %v1696_v33 = vadd.f32 %v1695_v30, %v1694_v21  ;;  %v2116_v34 = vpop.f32.mrb[19].mxu1 }
 0x22a   :  { %v1697_v36 = vsel %vm1683_vm3, %v2114_v31, 0.0 }
 0x22b   :  { %v1698_v37 = vadd.f32 %v1697_v36, %v1696_v33 }
 0x22d   :  { %v1703_v38 = vadd.f32 %v1939_v35, %v1698_v37 }
 0x22f   :  { %v1704_v39 = vmax.f32 %v1703_v38, 0.0 }
 0x231   :  { %2132 = vmatmul.mubr.msk.f32.vlgmr.msra.gmra.mrb[20].mxu0 %vm1709_vm4, %v1704_v39 }
 0x304   :  { %v1779_v43 = vpop.f32.mrb[20].mxu0 }
 0x305   :  { %v1780_v44 = vadd.f32 %v1940_v40, %v1779_v43  ;;  %v2133_v42 = vpop.f32.mrb[21].mxu0 }
 0x307   :  { %1784 = vrot.lane.b32.xlu0 %v1780_v44, %s2300_s21 }
 0x379   :  { %v1785_v45 = vpop.permute.xlu0 %1784 }
 0x37a   :  { %v1787_v46 = vsel %vm1709_vm4, %v1704_v39, %v1785_v45 }
 0x37b   :  { %v1789_v47 = vsel %vm1788_vm5, %v1787_v46, 0.0 }
 0x37c   :  { %1790 = vst [vmem:[%s2834_s3] sm:$0x3] %v1789_v47 }

</bundles_post_ra>
